<compile_context>
chip_gen: v6e
topology: v6e:2x2x1
jax: 0.10.0
libtpu: 0.0.40
codegen_flags: <defaults>
</compile_context>

<pallas_src>
import jax
import jax.numpy as jnp
from jax.experimental import pallas as pl
from jax.experimental.pallas import tpu as pltpu

NUM_CLASSES = 4

# severity_matrix[true][pred]; class order: Black=0, Blue=1, Green=2, TTR=3
_SEVERITY = (
    (0.0, 4.0, 5.0, 2.0),  # true = Black
    (5.0, 0.0, 3.0, 1.0),  # true = Blue
    (5.0, 3.0, 0.0, 2.0),  # true = Green
    (3.0, 2.0, 2.0, 0.0),  # true = TTR
)

# Each severity row packed into a scalar int: 3 bits per predicted class.
_ROW_BITS = tuple(
    sum(int(v) << (3 * j) for j, v in enumerate(row)) for row in _SEVERITY
)  # (1376, 709, 1053, 147)


def _weighted_loss_kernel(nb_ref, logits_ref, tgt_ref, loss_ref):
    """nb_ref: SMEM (1,) i32 true batch size; logits_ref: (C, TB) f32;
    tgt_ref: (1, TB) i32; loss_ref: (1, 8, 128) f32 resident partial sum."""
    C, TB = logits_ref.shape
    i_idx = pl.program_id(1)  # batch block within this split

    # Zero the resident per-split partial-sum block at the start of each split.
    @pl.when(i_idx == 0)
    def _():
        loss_ref[...] = jnp.zeros_like(loss_ref)

    x = logits_ref[...]                                               # (C, TB) f32
    tgt = tgt_ref[...]                                                # (1, TB) i32

    cls_iota = jax.lax.broadcasted_iota(jnp.int32, (C, TB), 0)        # class id / sublane

    # --- cross-entropy (log-softmax over the class / sublane axis) ---
    col_max = jnp.max(x, axis=0, keepdims=True)                       # (1, TB)
    shifted = x - col_max                                             # (C, TB)
    lse = jnp.log(jnp.sum(jnp.exp(shifted), axis=0, keepdims=True))   # (1, TB)
    shifted_t = jnp.sum(jnp.where(cls_iota == tgt, shifted, 0.0),
                        axis=0, keepdims=True)                        # (1, TB)
    ce = lse - shifted_t                                              # (1, TB)

    # --- pred = argmax(softmax(logits)) == argmax(logits); first index on ties ---
    pred = jnp.min(jnp.where(x == col_max, cls_iota, C),
                   axis=0, keepdims=True)                             # (1, TB) i32

    # --- severity[target, pred] via bit-packed scalar rows (no array consts) ---
    c0 = tgt == 0
    c1 = tgt == 1
    c2 = tgt == 2
    row = jnp.where(c0, _ROW_BITS[0],
          jnp.where(c1, _ROW_BITS[1],
          jnp.where(c2, _ROW_BITS[2], _ROW_BITS[3]))).astype(jnp.int32)   # (1, TB)
    sev = ((row >> (pred * 3)) & 7).astype(jnp.float32)               # (1, TB)

    # --- mask padded lanes, accumulate partial sum into the resident block ---
    nb = nb_ref[0]
    col0 = (pl.program_id(0) * pl.num_programs(1) + i_idx) * TB
    lane = jax.lax.broadcasted_iota(jnp.int32, (1, TB), 1)
    valid = (lane + col0) < nb
    partial = jnp.sum(jnp.where(valid, ce + sev, 0.0),
                      axis=1, keepdims=True)                          # (1, 1)
    # Broadcast add: every element of the block carries the same running sum.
    loss_ref[...] += partial


def weighted_classification_loss(outputs: jnp.ndarray, targets: jnp.ndarray,
                                 *, max_tile: int = 262144) -> jnp.ndarray:
    """outputs: [B, NUM_CLASSES] float, targets: [B] int -> scalar float32 loss."""
    B, C = outputs.shape
    assert C == NUM_CLASSES
    outputs = outputs.astype(jnp.float32)
    targets = targets.astype(jnp.int32)

    # --- tiling: big lane-dense blocks; 2-way split only when it carries data ---
    lanes = 128 * pl.cdiv(B, 128)
    n_split = 2 if pl.cdiv(lanes, max_tile) >= 2 else 1        # megacore split (v7x)
    per_split = 128 * pl.cdiv(pl.cdiv(lanes, n_split), 128)    # lanes per split
    n_per_split = pl.cdiv(per_split, max_tile)                 # blocks per split
    tb = 128 * pl.cdiv(pl.cdiv(per_split, n_per_split), 128)   # balanced tile (mult. of 128)
    b_pad = n_split * n_per_split * tb                         # only ragged-tail padding

    # Lane-dense layout via a single fused pad-of-transpose (no zeros+scatter pass).
    logits_t = jnp.pad(outputs.T, ((0, 0), (0, b_pad - B)))    # (C, b_pad) f32
    tgt2d = jnp.pad(targets[None, :], ((0, 0), (0, b_pad - B)))  # (1, b_pad) i32
    nb = jnp.asarray([B], jnp.int32)                           # scalar-prefetch batch size

    # Explicit VMEM budget: double-buffered blocks + output + headroom.
    block_bytes = C * tb * 4 + tb * 4
    needed = 2 * block_bytes + n_split * 8 * 128 * 4 + (1 << 20)
    vmem_limit = int(min(max(2 * needed, 32 << 20), 48 << 20))

    partials = pl.pallas_call(
        _weighted_loss_kernel,
        out_shape=jax.ShapeDtypeStruct((n_split, 8, 128), jnp.float32),
        grid_spec=pltpu.PrefetchScalarGridSpec(
            num_scalar_prefetch=1,
            grid=(n_split, n_per_split),
            in_specs=[
                pl.BlockSpec((C, tb), lambda c, i, nb_ref: (0, c * n_per_split + i)),
                pl.BlockSpec((1, tb), lambda c, i, nb_ref: (0, c * n_per_split + i)),
            ],
            out_specs=pl.BlockSpec((1, 8, 128), lambda c, i, nb_ref: (c, 0, 0)),
        ),
        compiler_params=pltpu.CompilerParams(
            dimension_semantics=("parallel", "arbitrary"),
            vmem_limit_bytes=vmem_limit),
    )(nb, logits_t, tgt2d)

    # Combine per-split partial sums; mean over the true batch size.
    return jnp.sum(partials[:, 0, 0]) / jnp.float32(B)


if __name__ == "__main__":
    key = jax.random.PRNGKey(0)
    k1, k2 = jax.random.split(key)
    B = 8
    outputs = jax.random.normal(k1, (B, NUM_CLASSES), dtype=jnp.float32)
    targets = jax.random.randint(k2, (B,), 0, NUM_CLASSES, dtype=jnp.int32)

    loss = weighted_classification_loss(outputs, targets)
    jax.block_until_ready(loss)

    # Pure-JAX reference (same semantics as the PyTorch module: sev + CE, mean over batch).
    log_probs = outputs - jax.nn.logsumexp(outputs, axis=1, keepdims=True)
    ce_ref = -jnp.take_along_axis(log_probs, targets[:, None], axis=1)[:, 0]
    preds_ref = jnp.argmax(outputs, axis=1)
    w = jnp.asarray(_SEVERITY, dtype=jnp.float32)
    sev_ref = w[targets, preds_ref]
    ref = jnp.mean(sev_ref + ce_ref)
    assert jnp.allclose(loss, ref, atol=1e-5, rtol=1e-5), (loss, ref)

    print("KERNEL_OK")
</pallas_src>

<mosaic_0001>
module attributes {stable_mosaic.version = 11 : i64} {
  func.func @_weighted_loss_kernel(%arg0: i32, %arg1: i32, %arg2: memref<1xi32, #tpu.memory_space<smem>>, %arg3: memref<4x128xf32, #tpu.memory_space<vmem>>, %arg4: memref<1x128xi32, #tpu.memory_space<vmem>>, %arg5: memref<1x8x128xf32, #tpu.memory_space<vmem>>) attributes {dimension_semantics = [#tpu.dimension_semantics<parallel>, #tpu.dimension_semantics<arbitrary>], iteration_bounds = array<i64: 1, 1>, scalar_prefetch = 1 : i64, scratch_operands = 0 : i64, tpu.core_type = #tpu.core_type<tc>, window_params = [{transform_indices = @transform_0, window_bounds = array<i64: 4, 128>}, {transform_indices = @transform_1, window_bounds = array<i64: 1, 128>}, {transform_indices = @transform_2, window_bounds = array<i64: 1, 8, 128>}]} {
    %c0_i32 = arith.constant 0 : i32
    %0 = arith.cmpi eq, %arg1, %c0_i32 : i32
    %1 = arith.extui %0 : i1 to i32
    %c0_i32_0 = arith.constant 0 : i32
    %2 = arith.cmpi ne, %1, %c0_i32_0 : i32
    scf.if %2 {
      %cst_19 = arith.constant 0.000000e+00 : f32
      %65 = vector.broadcast %cst_19 : f32 to vector<1x8x128xf32>
      %c0_20 = arith.constant 0 : index
      %c0_21 = arith.constant 0 : index
      %c0_22 = arith.constant 0 : index
      %66 = vector.load %arg5[%c0_20, %c0_21, %c0_22] : memref<1x8x128xf32, #tpu.memory_space<vmem>>, vector<1x8x128xf32>
      tpu.vector_store %arg5[%c0_20, %c0_21, %c0_22], %65 {strides = array<i32>} : memref<1x8x128xf32, #tpu.memory_space<vmem>>, vector<1x8x128xf32>,
    } else {
    }
    %c0 = arith.constant 0 : index
    %c0_1 = arith.constant 0 : index
    %3 = vector.load %arg3[%c0, %c0_1] : memref<4x128xf32, #tpu.memory_space<vmem>>, vector<4x128xf32>
    %c0_2 = arith.constant 0 : index
    %c0_3 = arith.constant 0 : index
    %4 = vector.load %arg4[%c0_2, %c0_3] : memref<1x128xi32, #tpu.memory_space<vmem>>, vector<1x128xi32>
    %5 = tpu.iota {dimensions = array<i32: 0>} : vector<4x128xi32>
    %cst = arith.constant dense<0xFF800000> : vector<128xf32>
    %6 = vector.multi_reduction <maximumf>, %3, %cst [0] : vector<4x128xf32> to vector<128xf32>
    %7 = vector.shape_cast %6 : vector<128xf32> to vector<1x128xf32>
    %8 = vector.broadcast %7 : vector<1x128xf32> to vector<4x128xf32>
    %9 = arith.subf %3, %8 : vector<4x128xf32>
    %10 = math.exp %9 : vector<4x128xf32>
    %cst_4 = arith.constant dense<0.000000e+00> : vector<128xf32>
    %11 = vector.multi_reduction <add>, %10, %cst_4 [0] : vector<4x128xf32> to vector<128xf32>
    %12 = vector.shape_cast %11 : vector<128xf32> to vector<1x128xf32>
    %13 = math.log %12 : vector<1x128xf32>
    %14 = vector.broadcast %4 : vector<1x128xi32> to vector<4x128xi32>
    %15 = arith.cmpi eq, %5, %14 : vector<4x128xi32>
    %cst_5 = arith.constant 0.000000e+00 : f32
    %16 = vector.broadcast %cst_5 : f32 to vector<4x128xf32>
    %17 = arith.select %15, %9, %16 : vector<4x128xi1>, vector<4x128xf32>
    %cst_6 = arith.constant dense<0.000000e+00> : vector<128xf32>
    %18 = vector.multi_reduction <add>, %17, %cst_6 [0] : vector<4x128xf32> to vector<128xf32>
    %19 = vector.shape_cast %18 : vector<128xf32> to vector<1x128xf32>
    %20 = arith.subf %13, %19 : vector<1x128xf32>
    %21 = vector.broadcast %7 : vector<1x128xf32> to vector<4x128xf32>
    %22 = arith.cmpf oeq, %3, %21 : vector<4x128xf32>
    %c4_i32 = arith.constant 4 : i32
    %23 = vector.broadcast %c4_i32 : i32 to vector<4x128xi32>
    %24 = arith.select %22, %5, %23 : vector<4x128xi1>, vector<4x128xi32>
    %cst_7 = arith.constant dense<2147483647> : vector<128xi32>
    %25 = vector.multi_reduction <minsi>, %24, %cst_7 [0] : vector<4x128xi32> to vector<128xi32>
    %26 = vector.shape_cast %25 : vector<128xi32> to vector<1x128xi32>
    %c0_i32_8 = arith.constant 0 : i32
    %27 = vector.broadcast %c0_i32_8 : i32 to vector<1x128xi32>
    %28 = arith.cmpi eq, %4, %27 : vector<1x128xi32>
    %c1_i32 = arith.constant 1 : i32
    %29 = vector.broadcast %c1_i32 : i32 to vector<1x128xi32>
    %30 = arith.cmpi eq, %4, %29 : vector<1x128xi32>
    %c2_i32 = arith.constant 2 : i32
    %31 = vector.broadcast %c2_i32 : i32 to vector<1x128xi32>
    %32 = arith.cmpi eq, %4, %31 : vector<1x128xi32>
    %c1053_i32 = arith.constant 1053 : i32
    %c147_i32 = arith.constant 147 : i32
    %33 = vector.broadcast %c1053_i32 : i32 to vector<1x128xi32>
    %34 = vector.broadcast %c147_i32 : i32 to vector<1x128xi32>
    %35 = arith.select %32, %33, %34 : vector<1x128xi1>, vector<1x128xi32>
    %c709_i32 = arith.constant 709 : i32
    %36 = vector.broadcast %c709_i32 : i32 to vector<1x128xi32>
    %37 = arith.select %30, %36, %35 : vector<1x128xi1>, vector<1x128xi32>
    %c1376_i32 = arith.constant 1376 : i32
    %38 = vector.broadcast %c1376_i32 : i32 to vector<1x128xi32>
    %39 = arith.select %28, %38, %37 : vector<1x128xi1>, vector<1x128xi32>
    %c3_i32 = arith.constant 3 : i32
    %40 = vector.broadcast %c3_i32 : i32 to vector<1x128xi32>
    %41 = arith.muli %26, %40 : vector<1x128xi32>
    %42 = arith.shrsi %39, %41 : vector<1x128xi32>
    %c7_i32 = arith.constant 7 : i32
    %43 = vector.broadcast %c7_i32 : i32 to vector<1x128xi32>
    %44 = arith.andi %42, %43 : vector<1x128xi32>
    %45 = arith.sitofp %44 : vector<1x128xi32> to vector<1x128xf32>
    %c0_9 = arith.constant 0 : index
    %46 = memref.load %arg2[%c0_9] : memref<1xi32, #tpu.memory_space<smem>>
    %c1_i32_10 = arith.constant 1 : i32
    %47 = arith.muli %arg0, %c1_i32_10 : i32
    %48 = arith.addi %47, %arg1 : i32
    %c128_i32 = arith.constant 128 : i32
    %49 = arith.muli %48, %c128_i32 : i32
    %50 = tpu.iota {dimensions = array<i32: 1>} : vector<1x128xi32>
    %51 = vector.broadcast %49 : i32 to vector<1x128xi32>
    %52 = arith.addi %50, %51 : vector<1x128xi32>
    %53 = vector.broadcast %46 : i32 to vector<1x128xi32>
    %54 = arith.cmpi slt, %52, %53 : vector<1x128xi32>
    %55 = arith.addf %20, %45 : vector<1x128xf32>
    %cst_11 = arith.constant 0.000000e+00 : f32
    %56 = vector.broadcast %cst_11 : f32 to vector<1x128xf32>
    %57 = arith.select %54, %55, %56 : vector<1x128xi1>, vector<1x128xf32>
    %cst_12 = arith.constant dense<0.000000e+00> : vector<1xf32>
    %58 = vector.multi_reduction <add>, %57, %cst_12 [1] : vector<1x128xf32> to vector<1xf32>
    %59 = vector.shape_cast %58 : vector<1xf32> to vector<1x1xf32>
    %c0_13 = arith.constant 0 : index
    %c0_14 = arith.constant 0 : index
    %c0_15 = arith.constant 0 : index
    %60 = vector.load %arg5[%c0_13, %c0_14, %c0_15] : memref<1x8x128xf32, #tpu.memory_space<vmem>>, vector<1x8x128xf32>
    %61 = vector.shape_cast %59 : vector<1x1xf32> to vector<1x1x1xf32>
    %62 = vector.broadcast %61 : vector<1x1x1xf32> to vector<1x8x128xf32>
    %63 = arith.addf %60, %62 : vector<1x8x128xf32>
    %c0_16 = arith.constant 0 : index
    %c0_17 = arith.constant 0 : index
    %c0_18 = arith.constant 0 : index
    %64 = vector.load %arg5[%c0_16, %c0_17, %c0_18] : memref<1x8x128xf32, #tpu.memory_space<vmem>>, vector<1x8x128xf32>
    tpu.vector_store %arg5[%c0_16, %c0_17, %c0_18], %63 {strides = array<i32>} : memref<1x8x128xf32, #tpu.memory_space<vmem>>, vector<1x8x128xf32>,
    return
  }
  func.func @transform_0(%arg0: i32, %arg1: i32, %arg2: memref<1xi32, #tpu.memory_space<smem>>) -> (i32, i32) {
    %c1_i32 = arith.constant 1 : i32
    %0 = arith.muli %arg0, %c1_i32 : i32
    %1 = arith.addi %0, %arg1 : i32
    %c0_i32 = arith.constant 0 : i32
    %c0_i32_0 = arith.constant 0 : i32
    return %c0_i32, %1 : i32, i32
  }
  func.func @transform_1(%arg0: i32, %arg1: i32, %arg2: memref<1xi32, #tpu.memory_space<smem>>) -> (i32, i32) {
    %c1_i32 = arith.constant 1 : i32
    %0 = arith.muli %arg0, %c1_i32 : i32
    %1 = arith.addi %0, %arg1 : i32
    %c0_i32 = arith.constant 0 : i32
    %c0_i32_0 = arith.constant 0 : i32
    return %c0_i32, %1 : i32, i32
  }
  func.func @transform_2(%arg0: i32, %arg1: i32, %arg2: memref<1xi32, #tpu.memory_space<smem>>) -> (i32, i32, i32) {
    %c0_i32 = arith.constant 0 : i32
    %c0_i32_0 = arith.constant 0 : i32
    %c0_i32_1 = arith.constant 0 : i32
    return %arg0, %c0_i32, %c0_i32_0 : i32, i32, i32
  }
}

</mosaic_0001>

<bundles_post_ra>
// kernel: tpu_custom_call.1
= control target key start
LH: loop header
LB: loop body
LE: loop exit
PB: predicated region body
PF: predicated region fallthrough
CT: control target
= control target key end

     0   :  { %9 = vsyncpa [#allocation5], 0  ;;  %s245_s0 = inlined_call_operand.<no memory space> [shape: s32[1], index: 0, kind: input, shape index: {}]   ;;  %s246_s1 = inlined_call_operand.hbm [shape: f32[4,128], index: 1, kind: input, shape index: {}]   ;;  %s247_s2 = inlined_call_operand.vmem [shape: s32[1,128], index: 2, kind: input, shape index: {}]   ;;  %s248_s3 = inlined_call_operand.hbm [shape: f32[1,8,128], index: 3, kind: output, shape index: {}]  }
   0x1   :  { %10 = vsyncpa [#allocation6], 0  ;;  %s201_s12 = smov [#allocation4]  }
   0x2   :  { %s20_s13 = sshll.u32 %s201_s12, 4  ;;  %s21_s13 = int_to_ptr.vmem [resolvable:$true] %s20_s13 }
   0x3   :  { %s165_s14 = scalar_lea.vmem %s21_s13, 64  ;;  %p170_p1 = scmp.lt.s32.totalorder %s21_s13, %s21_s13 }
   0x4   :  { %p166_p0 = scmp.ne.s32.totalorder %s21_s13, %s165_s14  ;;  %p171_p2 = scmp.lt.s32.totalorder %s165_s14, %s165_s14 }
   0x6   :  { %p172_p3 = por %p171_p2, %p170_p1 }
   0x8   :  { %p173_p4 = pnand %p172_p3, %p166_p0 }
   0xa   :  { %176 = shalt.err (!%p173_p4)
}
   0xb   :  { %23 = dma.hbm_to_vmem [thread:$0]  %s246_s1, 64, %s21_s13, [#allocation5]  }
   0xc   :  { %197 = dma.done.wait [#allocation5], 64  }
   0xd   :  { %198 = vsyncadd [#allocation5], 4294967232  ;;  %vm53_vm0 = vcmask 1043456   ;;  %v49_v0 = vld [vmem:[#allocation4] sm:$0xf]  ;;  %v51_v5 = vlaneseq  ;;  %v202_v33 = vmov 147   ;;  %v116_v50 = vstv %s245_s0 }
   0xe   :  { %v54_v1 = vsel %vm53_vm0, %v49_v0, -inf  ;;  %v50_v16 = vld [vmem:[%s247_s2] sm:$0x1]  ;;  %vm120_vm10 = vcmask 1040384   ;;  %s203_s19 = smov [#allocation7]  }
   0xf   :  { %v55_v2 = vrot.slane %v54_v1, 4  ;;  %v228_v8 = vshrl.u32 %v51_v5, 7  ;;  %vm101_vm5 = vcmp.eq.s32.totalorder %v50_v16, 2  ;;  %vm100_vm7 = vcmp.eq.s32.totalorder %v50_v16, 1  ;;  %s137_s20 = sshll.u32 %s203_s19, 4  ;;  %s138_s20 = int_to_ptr.vmem [resolvable:$true] %s137_s20 }
  0x10   :  { %v102_v34 = vsel %vm101_vm5, 1053, %v202_v33  ;;  %vm99_vm8 = vcmp.eq.s32.totalorder %v50_v16, 0  ;;  %v113_v47 = vand.u32 127, %v51_v5  ;;  %s177_s21 = scalar_lea.vmem %s138_s20, 128  ;;  %p182_p6 = scmp.lt.s32.totalorder %s138_s20, %s138_s20 }
  0x11   :  { %v56_v3 = vmax.f32 %v54_v1, %v55_v2  ;;  %v75_v15 = vsub.s32 0, %v228_v8  ;;  %v103_v38 = vsel %vm100_vm7, 709, %v102_v34  ;;  %p178_p5 = scmp.ne.s32.totalorder %s138_s20, %s177_s21  ;;  %p183_p7 = scmp.lt.s32.totalorder %s177_s21, %s177_s21 }
  0x12   :  { %v104_v40 = vsel %vm99_vm8, 1376, %v103_v38  ;;  %vm117_vm9 = vcmp.lt.s32.totalorder %v113_v47, %v116_v50 }
  0x13   :  { %v57_v4 = vrot.slane %v56_v3, 2  ;;  %v76_v17 = vrot.slane %v50_v16, %v75_v15  ;;  %p184_p8 = por %p183_p7, %p182_p6 }
  0x15   :  { %v58_v6 = vmax.f32 %v56_v3, %v57_v4  ;;  %vm77_vm3 = vcmp.eq.s32.totalorder %v228_v8, %v76_v17  ;;  %p185_p9 = pnand %p184_p8, %p178_p5 }
  0x17   :  { %v59_v7 = vrot.slane %v58_v6, 1 }
  0x19   :  { %v60_v9 = vmax.f32 %v58_v6, %v59_v7 }
  0x1b   :  { %v61_v10 = vsub.f32 %v49_v0, %v60_v9  ;;  %vm87_vm1 = vcmp.eq.f32.partialorder %v49_v0, %v60_v9 }
  0x1c   :  { %v88_v11 = vsel %vm87_vm1, %v228_v8, 4 }
  0x1d   :  { %v62_v12 = vmul.f32 1.442695, %v61_v10  ;;  %v89_v13 = vsel %vm53_vm0, %v88_v11, 2147483647  ;;  %v78_v21 = vsel %vm77_vm3, %v61_v10, 0.0 }
  0x1e   :  { %v90_v14 = vrot.slane %v89_v13, 4  ;;  %v79_v24 = vsel %vm53_vm0, %v78_v21, 0.0 }
  0x1f   :  { %153 = vpow2.f32 %v62_v12  ;;  %v80_v28 = vrot.slane %v79_v24, 4 }
  0x20   :  { %vm91_vm2 = vcmp.lt.s32.totalorder %v89_v13, %v90_v14 }
  0x21   :  { %v92_v18 = vsel %vm91_vm2, %v89_v13, %v90_v14  ;;  %v81_v32 = vadd.f32 %v80_v28, %v79_v24 }
  0x22   :  { %v93_v19 = vrot.slane %v92_v18, 2 }
  0x23   :  { %v82_v37 = vrot.slane %v81_v32, 2 }
  0x24   :  { %vm94_vm4 = vcmp.lt.s32.totalorder %v92_v18, %v93_v19 }
  0x25   :  { %v95_v25 = vsel %vm94_vm4, %v92_v18, %v93_v19  ;;  %v83_v41 = vadd.f32 %v82_v37, %v81_v32 }
  0x26   :  { %v96_v29 = vrot.slane %v95_v25, 1 }
  0x27   :  { %v84_v43 = vrot.slane %v83_v41, 1 }
  0x28   :  { %vm97_vm6 = vcmp.lt.s32.totalorder %v95_v25, %v96_v29 }
  0x29   :  { %v98_v36 = vsel %vm97_vm6, %v95_v25, %v96_v29  ;;  %v85_v45 = vadd.f32 %v84_v43, %v83_v41 }
  0x2a   :  { %v105_v39 = vmul.u32 3, %v98_v36 }
  0x2c   :  { %v154_v20 = vpop.eup %153  ;;  %v106_v42 = vshra.s32 %v104_v40, %v105_v39 }
  0x2d   :  { %v64_v22 = vsel %vm53_vm0, %v154_v20, 0.0 }
  0x2e   :  { %v65_v23 = vrot.slane %v64_v22, 4  ;;  %v107_v44 = vand.u32 7, %v106_v42 }
  0x30   :  { %v66_v26 = vadd.f32 %v65_v23, %v64_v22  ;;  %v108_v49 = vcvt.s32.f32 %v107_v44 }
  0x32   :  { %v67_v27 = vrot.slane %v66_v26, 2 }
  0x34   :  { %v68_v30 = vadd.f32 %v67_v27, %v66_v26 }
  0x36   :  { %v69_v31 = vrot.slane %v68_v30, 1 }
  0x38   :  { %v70_v35 = vadd.f32 %v69_v31, %v68_v30 }
  0x3a   :  { %155 = vlog2.f32 %v70_v35 }
  0x47   :  { %v156_v46 = vpop.eup %155 }
  0x48   :  { %v72_v48 = vmul.f32 0.6931472, %v156_v46 }
  0x4a   :  { %v86_v51 = vsub.f32 %v72_v48, %v85_v45 }
  0x4c   :  { %v118_v52 = vadd.f32 %v108_v49, %v86_v51 }
  0x4e   :  { %v119_v53 = vsel %vm117_vm9, %v118_v52, 0.0 }
  0x4f   :  { %v121_v54 = vsel %vm120_vm10, %v119_v53, 0.0 }
  0x50   :  { %122 = vadd.xlane.f32.xlu0 %v121_v54 }
  0xd9   :  { %v123_v55 = vpop.xlane.xlu0 %122 }
  0xda   :  { %v128_v56 = vrot.slane %v123_v55, %v75_v15 }
  0xdc   :  { %130 = vst [vmem:[#allocation7] sm:$0xff] %v128_v56 }
  0xdd   :  { %188 = shalt.err (!%p185_p9)
}
  0xde   :  { %140 = dma.vmem_to_hbm [thread:$0]  %s138_s20, 128, %s248_s3, [#allocation6]  }
  0xdf   :  { %199 = dma.done.wait [#allocation6], 128  }
  0xe0   :  { %200 = vsyncadd [#allocation6], 4294967168 }
  0xe1   :  { %144 = vsyncpa [#allocation5], 1 }
  0xe2   :  { %145 = vsyncpa [#allocation6], 1 }

</bundles_post_ra>
